<compile_context>
chip_gen: v7x
topology: tpu7x:2x2x1
jax: 0.10.0
libtpu: 0.0.40
codegen_flags: <defaults>
</compile_context>

<pallas_src>
import functools

import jax
import jax.numpy as jnp
import numpy as np
from jax.experimental import pallas as pl
from jax.experimental.pallas import tpu as pltpu

DELTA = 1e-6                      # `delta` from the PyTorch module
LOG100 = float(np.log(100.0))


# ----------------------------------------------------------------------------
# Pallas kernel: one lane-tile of flattened (batch*dim) elements.
#   p_ref : (3, K, TN)  fused raw dsparams (group 0 = a, 1 = b, 2 = w logits)
#   x_ref : (1, TN)     input values
#   o_ref : (1, TN)     transformed output
# ----------------------------------------------------------------------------
def sigmoid_flow_kernel(p_ref, x_ref, o_ref, *, mollify):
    a_logits = p_ref[0]                        # (K, TN)
    b_raw = p_ref[1]                           # (K, TN)
    w_logits = p_ref[2]                        # (K, TN)
    x = x_ref[...]                             # (1, TN)

    # act_a = softplus(.) + delta   (numerically stable softplus)
    a = (jnp.maximum(a_logits, 0.0)
         + jnp.log1p(jnp.exp(-jnp.abs(a_logits))) + DELTA)
    b = b_raw
    if mollify != 0.0:                         # trace-time branch: dead code when 0
        a = a * (1.0 - mollify) + 1.0 * mollify
        b = b * (1.0 - mollify)                # act_b is identity; + 0.0*mollify

    # Unnormalized softmax numerator over the K mixture components (sublane axis);
    # the 1/sum(e) normalization is fused into the final (1, TN) divide below.
    m = jnp.max(w_logits, axis=0, keepdims=True)
    e = jnp.exp(w_logits - m)                  # (K, TN)

    pre_sigm = a * x + b                       # broadcast x over sublanes
    # sigmoid(z) == 0.5*tanh(0.5*z) + 0.5 : single EUP op on the big (K, TN) block.
    sigm = 0.5 * jnp.tanh(0.5 * pre_sigm) + 0.5

    num = jnp.sum(e * sigm, axis=0, keepdims=True)   # (1, TN)
    den = jnp.sum(e, axis=0, keepdims=True)          # (1, TN)
    x_pre = num / den                                 # == sum(softmax(w) * sigm)

    c = x_pre * (1.0 - DELTA) + 0.5 * DELTA
    # log(c*100) - log(100) - (log((1-c)*100) - log(100)) == log(c / (1 - c)):
    # single EUP log per element instead of two.
    o_ref[...] = jnp.log(c / (1.0 - c)).astype(o_ref.dtype)


# ----------------------------------------------------------------------------
# Wrapper: layout plumbing + pallas_call.
# ----------------------------------------------------------------------------
def _round_up(v, m):
    return (v + m - 1) // m * m


def sigmoid_flow_forward(x, dsparams, *, num_ds_dim, mollify=0.0, max_lanes=32768):
    """SigmoidFlow.forward. x: (B, D) f32, dsparams: (B, D, 3*num_ds_dim) f32 -> (B, D)."""
    B, D = x.shape
    K = num_ds_dim
    assert dsparams.shape == (B, D, 3 * K)
    N = B * D

    # (batch*dim) -> lanes; K -> sublanes.  Single relayout (one HBM pass) producing the
    # fused (3, K, N) parameter operand; the three groups are indexed in-kernel.
    # TODO(synk): have the producing layer emit dsparams directly in (3, K, B*D) layout
    # so no transpose HLO exists at all.
    x_flat = x.reshape(1, N).astype(jnp.float32)
    p = dsparams.astype(jnp.float32).reshape(N, 3, K).transpose(1, 2, 0)   # (3, K, N)

    # Lane-tile selection: as large as possible (amortize the ~0.35 us per-step cost,
    # stay ~roofline on HBM), but keep >= 2 blocks when each block still carries enough
    # DMA work, so both v7x TensorCores get a block.  The double-buffered working set at
    # tn = 32768 is only a few MiB, well inside every generation's scoped-VMEM default.
    if N <= 128:
        tn = N                                       # full-dim block (no masking issues)
    else:
        n128 = _round_up(N, 128)
        half = _round_up(pl.cdiv(N, 2), 128)
        if half >= 4096:                             # each half's DMA time >> step cost
            tn = min(max_lanes, half)
        else:
            tn = min(max_lanes, n128)                # single block for small problems

    grid = (pl.cdiv(N, tn),)                         # partial tail block; no jnp.pad
    kernel = functools.partial(sigmoid_flow_kernel, mollify=float(mollify))

    out = pl.pallas_call(
        kernel,
        grid=grid,
        in_specs=[
            pl.BlockSpec((3, K, tn), lambda i: (0, 0, i)),
            pl.BlockSpec((1, tn), lambda i: (0, i)),
        ],
        out_specs=pl.BlockSpec((1, tn), lambda i: (0, i)),
        out_shape=jax.ShapeDtypeStruct((1, N), jnp.float32),
        compiler_params=pltpu.CompilerParams(dimension_semantics=("parallel",)),
    )(p, x_flat)

    return out[0, :N].reshape(B, D)


# ----------------------------------------------------------------------------
# Pure-JAX reference mirroring the PyTorch forward exactly (two-log formulation).
# ----------------------------------------------------------------------------
def ref_sigmoid_flow(x, dsparams, num_ds_dim, mollify=0.0):
    ndim = num_ds_dim
    a_ = jax.nn.softplus(dsparams[..., 0 * ndim:1 * ndim]) + DELTA
    b_ = dsparams[..., 1 * ndim:2 * ndim]
    w = jax.nn.softmax(dsparams[..., 2 * ndim:3 * ndim], axis=-1)
    a = a_ * (1.0 - mollify) + 1.0 * mollify
    b = b_ * (1.0 - mollify) + 0.0 * mollify
    pre_sigm = a * x[..., None] + b
    sigm = jax.nn.sigmoid(pre_sigm)
    x_pre = jnp.sum(w * sigm, axis=-1)
    c = x_pre * (1.0 - DELTA) + DELTA * 0.5
    logf = lambda v: jnp.log(v * 100.0) - LOG100
    return logf(c) - logf(1.0 - c)


# ----------------------------------------------------------------------------
if __name__ == "__main__":
    batch, dim, num_ds_dim = 32, 8, 4          # dsparams: (32, 8, 12); N = 256

    key = jax.random.PRNGKey(0)
    kx, kp = jax.random.split(key)
    x = jax.random.normal(kx, (batch, dim), jnp.float32)
    dsparams = jax.random.normal(kp, (batch, dim, 3 * num_ds_dim), jnp.float32)

    y = sigmoid_flow_forward(x, dsparams, num_ds_dim=num_ds_dim)
    y = jax.block_until_ready(y)

    y_ref = ref_sigmoid_flow(x, dsparams, num_ds_dim)

    assert y.shape == (batch, dim)
    np.testing.assert_allclose(np.asarray(y), np.asarray(y_ref), rtol=1e-5, atol=1e-5)
    print("KERNEL_OK")
</pallas_src>

<mosaic_0001>
module attributes {stable_mosaic.version = 11 : i64} {
  func.func @sigmoid_flow_kernel(%arg0: i32, %arg1: memref<3x4x256xf32, #tpu.memory_space<vmem>>, %arg2: memref<1x256xf32, #tpu.memory_space<vmem>>, %arg3: memref<1x256xf32, #tpu.memory_space<vmem>>) attributes {dimension_semantics = [#tpu.dimension_semantics<parallel>], iteration_bounds = array<i64: 1>, scalar_prefetch = 0 : i64, scratch_operands = 0 : i64, tpu.core_type = #tpu.core_type<tc>, window_params = [{transform_indices = @transform_0, window_bounds = array<i64: 3, 4, 256>}, {transform_indices = @transform_1, window_bounds = array<i64: 1, 256>}, {transform_indices = @transform_2, window_bounds = array<i64: 1, 256>}]} {
    %c0 = arith.constant 0 : index
    %c0_0 = arith.constant 0 : index
    %c0_1 = arith.constant 0 : index
    %0 = vector.load %arg1[%c0, %c0_0, %c0_1] : memref<3x4x256xf32, #tpu.memory_space<vmem>>, vector<1x4x256xf32>
    %1 = vector.shape_cast %0 : vector<1x4x256xf32> to vector<4x256xf32>
    %c1 = arith.constant 1 : index
    %c0_2 = arith.constant 0 : index
    %c0_3 = arith.constant 0 : index
    %2 = vector.load %arg1[%c1, %c0_2, %c0_3] : memref<3x4x256xf32, #tpu.memory_space<vmem>>, vector<1x4x256xf32>
    %3 = vector.shape_cast %2 : vector<1x4x256xf32> to vector<4x256xf32>
    %c2 = arith.constant 2 : index
    %c0_4 = arith.constant 0 : index
    %c0_5 = arith.constant 0 : index
    %4 = vector.load %arg1[%c2, %c0_4, %c0_5] : memref<3x4x256xf32, #tpu.memory_space<vmem>>, vector<1x4x256xf32>
    %5 = vector.shape_cast %4 : vector<1x4x256xf32> to vector<4x256xf32>
    %c0_6 = arith.constant 0 : index
    %c0_7 = arith.constant 0 : index
    %6 = vector.load %arg2[%c0_6, %c0_7] : memref<1x256xf32, #tpu.memory_space<vmem>>, vector<1x256xf32>
    %cst = arith.constant 0.000000e+00 : f32
    %7 = vector.broadcast %cst : f32 to vector<4x256xf32>
    %8 = arith.maximumf %1, %7 : vector<4x256xf32>
    %9 = math.absf %1 : vector<4x256xf32>
    %cst_8 = arith.constant 0.000000e+00 : f32
    %10 = vector.broadcast %cst_8 : f32 to vector<4x256xf32>
    %11 = arith.subf %10, %9 : vector<4x256xf32>
    %12 = math.exp %11 : vector<4x256xf32>
    %13 = math.log1p %12 : vector<4x256xf32>
    %14 = arith.addf %8, %13 : vector<4x256xf32>
    %cst_9 = arith.constant 9.99999997E-7 : f32
    %15 = vector.broadcast %cst_9 : f32 to vector<4x256xf32>
    %16 = arith.addf %14, %15 : vector<4x256xf32>
    %cst_10 = arith.constant dense<0xFF800000> : vector<256xf32>
    %17 = vector.multi_reduction <maximumf>, %5, %cst_10 [0] : vector<4x256xf32> to vector<256xf32>
    %18 = vector.shape_cast %17 : vector<256xf32> to vector<1x256xf32>
    %19 = vector.broadcast %18 : vector<1x256xf32> to vector<4x256xf32>
    %20 = arith.subf %5, %19 : vector<4x256xf32>
    %21 = math.exp %20 : vector<4x256xf32>
    %22 = vector.broadcast %6 : vector<1x256xf32> to vector<4x256xf32>
    %23 = arith.mulf %16, %22 : vector<4x256xf32>
    %24 = arith.addf %23, %3 : vector<4x256xf32>
    %cst_11 = arith.constant 5.000000e-01 : f32
    %25 = vector.broadcast %cst_11 : f32 to vector<4x256xf32>
    %26 = arith.mulf %25, %24 : vector<4x256xf32>
    %27 = math.tanh %26 : vector<4x256xf32>
    %cst_12 = arith.constant 5.000000e-01 : f32
    %28 = vector.broadcast %cst_12 : f32 to vector<4x256xf32>
    %29 = arith.mulf %28, %27 : vector<4x256xf32>
    %cst_13 = arith.constant 5.000000e-01 : f32
    %30 = vector.broadcast %cst_13 : f32 to vector<4x256xf32>
    %31 = arith.addf %29, %30 : vector<4x256xf32>
    %32 = arith.mulf %21, %31 : vector<4x256xf32>
    %cst_14 = arith.constant dense<0.000000e+00> : vector<256xf32>
    %33 = vector.multi_reduction <add>, %32, %cst_14 [0] : vector<4x256xf32> to vector<256xf32>
    %34 = vector.shape_cast %33 : vector<256xf32> to vector<1x256xf32>
    %cst_15 = arith.constant dense<0.000000e+00> : vector<256xf32>
    %35 = vector.multi_reduction <add>, %21, %cst_15 [0] : vector<4x256xf32> to vector<256xf32>
    %36 = vector.shape_cast %35 : vector<256xf32> to vector<1x256xf32>
    %37 = arith.divf %34, %36 : vector<1x256xf32>
    %cst_16 = arith.constant 0.999998986 : f32
    %38 = vector.broadcast %cst_16 : f32 to vector<1x256xf32>
    %39 = arith.mulf %37, %38 : vector<1x256xf32>
    %cst_17 = arith.constant 5.000000e-07 : f32
    %40 = vector.broadcast %cst_17 : f32 to vector<1x256xf32>
    %41 = arith.addf %39, %40 : vector<1x256xf32>
    %cst_18 = arith.constant 1.000000e+00 : f32
    %42 = vector.broadcast %cst_18 : f32 to vector<1x256xf32>
    %43 = arith.subf %42, %41 : vector<1x256xf32>
    %44 = arith.divf %41, %43 : vector<1x256xf32>
    %45 = math.log %44 : vector<1x256xf32>
    %c0_19 = arith.constant 0 : index
    %c0_20 = arith.constant 0 : index
    %46 = vector.load %arg3[%c0_19, %c0_20] : memref<1x256xf32, #tpu.memory_space<vmem>>, vector<1x256xf32>
    tpu.vector_store %arg3[%c0_19, %c0_20], %45 {strides = array<i32>} : memref<1x256xf32, #tpu.memory_space<vmem>>, vector<1x256xf32>,
    return
  }
  func.func @transform_0(%arg0: i32) -> (i32, i32, i32) {
    %c0_i32 = arith.constant 0 : i32
    %c0_i32_0 = arith.constant 0 : i32
    %c0_i32_1 = arith.constant 0 : i32
    return %c0_i32, %c0_i32_0, %arg0 : i32, i32, i32
  }
  func.func @transform_1(%arg0: i32) -> (i32, i32) {
    %c0_i32 = arith.constant 0 : i32
    %c0_i32_0 = arith.constant 0 : i32
    return %c0_i32, %arg0 : i32, i32
  }
  func.func @transform_2(%arg0: i32) -> (i32, i32) {
    %c0_i32 = arith.constant 0 : i32
    %c0_i32_0 = arith.constant 0 : i32
    return %c0_i32, %arg0 : i32, i32
  }
}

</mosaic_0001>

<bundles_post_ra>
// kernel: tpu_custom_call.1
= control target key start
LH: loop header
LB: loop body
LE: loop exit
PB: predicated region body
PF: predicated region fallthrough
CT: control target
= control target key end

     0   :  { %7 = vsyncpa [#allocation3], 0  ;;  %s315_s0 = inlined_call_operand.hbm [shape: f32[3,4,256], index: 0, kind: input, shape index: {}]   ;;  %s316_s1 = inlined_call_operand.vmem [shape: f32[1,256], index: 1, kind: input, shape index: {}]   ;;  %s317_s2 = inlined_call_operand.hbm [shape: f32[1,256], index: 2, kind: output, shape index: {}]  }
   0x1   :  { %8 = vsyncpa [#allocation4], 0  ;;  %s255_s9 = smov [#allocation2]   ;;  %s207_s13 = scalar_lea.hbm %s315_s0, 384 }
   0x2   :  { %s14_s10 = sshll.u32 %s255_s9, 4  ;;  %p208_p0 = scmp.ne.s32.totalorder %s315_s0, %s207_s13  ;;  %s15_s10 = int_to_ptr.vmem [resolvable:$true] %s14_s10 }
   0x3   :  { %p211_p1 = scmp.lt.u32.totalorder %s207_s13, %s315_s0 }
   0x5   :  { %p213_p2 = pnand %p211_p1, %p208_p0 }
   0x7   :  { %216 = shalt.err (!%p213_p2)
}
   0x8   :  { %s217_s18 = scalar_lea.vmem %s15_s10, 384  ;;  %p222_p4 = scmp.lt.s32.totalorder %s15_s10, %s15_s10 }
   0x9   :  { %p218_p3 = scmp.ne.s32.totalorder %s15_s10, %s217_s18  ;;  %p223_p5 = scmp.lt.s32.totalorder %s217_s18, %s217_s18 }
   0xb   :  { %p224_p6 = por %p223_p5, %p222_p4 }
   0xd   :  { %p225_p7 = pnand %p224_p6, %p218_p3 }
   0xf   :  { %228 = shalt.err (!%p225_p7)
}
  0x10   :  { %s256_s19 = smov 128   ;;  %s257_s20 = smov 8  }
  0x11   :  { %20 = dma.hbm_to_vmem [thread:$0]  %s315_s0, 384, %s15_s10, [#allocation3], %s256_s19, %s256_s19, %s257_s20  }
  0x12   :  { %251 = dma.done.wait [#allocation3], 384  }
  0x13   :  { %252 = vsyncadd [#allocation3], 4294966912  ;;  %vm51_vm0 = vcmask 1043456   ;;  %v26_v0 = vld [vmem:[#allocation2] sm:$0xff]  ;;  %v30_v1 = vld [vmem:[#allocation2 + $0x10] sm:$0xff]  ;;  %v74_v24 = vlaneseq }
  0x14   :  { %v33_v2 = vand.u32 2147483647, %v26_v0  ;;  %v49_v3 = vcombine.high %v30_v1, %v30_v1  ;;  %v52_v4 = vsel %vm51_vm0, %v30_v1, -inf  ;;  %v31_v32 = vld [vmem:[%s316_s1] sm:$0x3]  ;;  %v32_v35 = vmax.f32 %v26_v0, 0.0 }
  0x15   :  { %v53_v5 = vrot.slane %v52_v4, 4  ;;  %v290_v27 = vshrl.u32 %v74_v24, 7  ;;  %v28_v47 = vld [vmem:[#allocation2 + $0x8] sm:$0xff]  ;;  %s259_s1 = smov [#allocation5]   ;;  %vm163_vm2 = vcmp.lt.s32.totalorder %v74_v24, 256 }
  0x16   :  { %v34_v6 = vsub.f32 0.0, %v33_v2  ;;  %v59_v7 = vsel %vm51_vm0, %v49_v3, -inf  ;;  %s172_s24 = sshll.u32 %s259_s1, 4  ;;  %s173_s24 = int_to_ptr.vmem [resolvable:$true] %s172_s24 }
  0x17   :  { %v54_v8 = vmax.f32 %v52_v4, %v53_v5  ;;  %v60_v9 = vrot.slane %v59_v7, 4  ;;  %v76_v30 = vsub.s32 0, %v290_v27  ;;  %v80_v31 = vsub.s32 1, %v290_v27  ;;  %s229_s25 = scalar_lea.vmem %s173_s24, 32  ;;  %p234_p9 = scmp.lt.s32.totalorder %s173_s24, %s173_s24 }
  0x18   :  { %v35_v10 = vmul.f32 1.442695, %v34_v6  ;;  %p230_p8 = scmp.ne.s32.totalorder %s173_s24, %s229_s25  ;;  %p235_p10 = scmp.lt.s32.totalorder %s229_s25, %s229_s25 }
  0x19   :  { %v55_v11 = vrot.slane %v54_v8, 2  ;;  %v61_v12 = vmax.f32 %v59_v7, %v60_v9  ;;  %v77_v36 = vrot.slane %v31_v32, %v76_v30  ;;  %v81_v37 = vrot.slane %v31_v32, %v80_v31 }
  0x1a   :  { %187 = vpow2.f32 %v35_v10  ;;  %p236_p11 = por %p235_p10, %p234_p9 }
  0x1b   :  { %v56_v13 = vmax.f32 %v54_v8, %v55_v11  ;;  %v62_v14 = vrot.slane %v61_v12, 2  ;;  %v82_v43 = vcombine.low %v77_v36, %v81_v37 }
  0x1c   :  { %p237_p12 = pnand %p236_p11, %p230_p8 }
  0x1d   :  { %v57_v15 = vrot.slane %v56_v13, 1  ;;  %v63_v16 = vmax.f32 %v61_v12, %v62_v14 }
  0x1f   :  { %v58_v17 = vmax.f32 %v56_v13, %v57_v15  ;;  %v64_v18 = vrot.slane %v63_v16, 1 }
  0x21   :  { %v65_v19 = vmax.f32 %v63_v16, %v64_v18 }
  0x23   :  { %v68_v20 = vcombine.low %v58_v17, %v65_v19 }
  0x24   :  { %v188_v21 = vpop.eup %187 }
  0x25   :  { %v37_v22 = vadd.f32 1.0, %v188_v21  ;;  %v70_v23 = vsub.f32 %v30_v1, %v68_v20  ;;  %v40_v26 = vmul.f32 -0.5, %v188_v21  ;;  %v43_v29 = vand.u32 2147483647, %v188_v21 }
  0x27   :  { %189 = vlog2.f32 %v37_v22  ;;  %v71_v25 = vmul.f32 1.442695, %v70_v23  ;;  %v41_v28 = vadd.f32 1.0, %v40_v26  ;;  %vm44_vm1 = vcmp.lt.f32.partialorder %v43_v29, 0.0004427343 }
  0x29   :  { %191 = vpow2.f32 %v71_v25  ;;  %v42_v33 = vmul.f32 %v188_v21, %v41_v28 }
  0x31   :  { %v190_v34 = vpop.eup %189 }
  0x32   :  { %v39_v38 = vmul.f32 0.6931472, %v190_v34  ;;  %v258_v34 = vmov 1966171168  }
  0x33   :  { %v192_v39 = vpop.eup %191 }
  0x34   :  { %v45_v40 = vsel %vm44_vm1, %v42_v33, %v39_v38  ;;  %v109_v41 = vcombine.high %v192_v39, %v192_v39  ;;  %v111_v44 = vsel %vm51_vm0, %v192_v39, 0.0 }
  0x35   :  { %v46_v42 = vadd.f32 %v45_v40, %v32_v35  ;;  %v112_v48 = vrot.slane %v111_v44, 4  ;;  %v147_v35 = vunpack.c.l.s4 %v258_v34 }
  0x36   :  { %v118_v46 = vsel %vm51_vm0, %v109_v41, 0.0 }
  0x37   :  { %v47_v45 = vadd.f32 1e-06, %v46_v42  ;;  %v119_v50 = vrot.slane %v118_v46, 4  ;;  %v113_v52 = vadd.f32 %v112_v48, %v111_v44  ;;  %v148_v36 = vunpack.c.0.s8 %v147_v35 }
  0x39   :  { %v84_v49 = vmul.f32 %v82_v43, %v47_v45  ;;  %v120_v54 = vadd.f32 %v119_v50, %v118_v46  ;;  %v114_v55 = vrot.slane %v113_v52, 2  ;;  %v151_v41 = vsub.s32 %v148_v36, %v290_v27 }
  0x3b   :  { %v85_v51 = vadd.f32 %v84_v49, %v28_v47  ;;  %v121_v56 = vrot.slane %v120_v54, 2  ;;  %v115_v57 = vadd.f32 %v114_v55, %v113_v52 }
  0x3d   :  { %v86_v53 = vmul.f32 0.5, %v85_v51  ;;  %v122_v58 = vadd.f32 %v121_v56, %v120_v54  ;;  %v116_v59 = vrot.slane %v115_v57, 1 }
  0x3f   :  { %193 = vtanh.f32 %v86_v53  ;;  %v123_v62 = vrot.slane %v122_v58, 1  ;;  %v117_v0 = vadd.f32 %v116_v59, %v115_v57 }
  0x41   :  { %v124_v2 = vadd.f32 %v123_v62, %v122_v58  ;;  %195 = vrcp.f32 %v117_v0 }
  0x43   :  { %197 = vrcp.f32 %v124_v2 }
  0x49   :  { %v194_v60 = vpop.eup %193 }
  0x4a   :  { %v88_v61 = vmul.f32 0.5, %v194_v60 }
  0x4b   :  { %v196_v15 = vpop.eup %195 }
  0x4c   :  { %v89_v63 = vadd.f32 0.5, %v88_v61 }
  0x4d   :  { %v198_v18 = vpop.eup %197 }
  0x4e   :  { %v90_v1 = vmul.f32 %v192_v39, %v89_v63 }
  0x50   :  { %v92_v3 = vcombine.high %v90_v1, %v90_v1  ;;  %v94_v4 = vsel %vm51_vm0, %v90_v1, 0.0 }
  0x51   :  { %v95_v5 = vrot.slane %v94_v4, 4 }
  0x52   :  { %v101_v6 = vsel %vm51_vm0, %v92_v3, 0.0 }
  0x53   :  { %v96_v7 = vadd.f32 %v95_v5, %v94_v4  ;;  %v102_v8 = vrot.slane %v101_v6, 4 }
  0x55   :  { %v97_v9 = vrot.slane %v96_v7, 2  ;;  %v103_v10 = vadd.f32 %v102_v8, %v101_v6 }
  0x57   :  { %v98_v11 = vadd.f32 %v97_v9, %v96_v7  ;;  %v104_v12 = vrot.slane %v103_v10, 2 }
  0x59   :  { %v99_v13 = vrot.slane %v98_v11, 1  ;;  %v105_v14 = vadd.f32 %v104_v12, %v103_v10 }
  0x5b   :  { %v100_v16 = vadd.f32 %v99_v13, %v98_v11  ;;  %v106_v17 = vrot.slane %v105_v14, 1 }
  0x5d   :  { %v107_v19 = vadd.f32 %v106_v17, %v105_v14  ;;  %v126_v20 = vmul.f32 %v196_v15, %v100_v16 }
  0x5f   :  { %v128_v21 = vmul.f32 %v198_v18, %v107_v19  ;;  %v129_v22 = vmul.f32 0.999999, %v126_v20 }
  0x61   :  { %v130_v23 = vmul.f32 0.999999, %v128_v21  ;;  %v131_v25 = vadd.f32 5e-07, %v129_v22 }
  0x63   :  { %v132_v26 = vadd.f32 5e-07, %v130_v23  ;;  %v133_v28 = vsub.f32 1.0, %v131_v25 }
  0x65   :  { %v134_v29 = vsub.f32 1.0, %v132_v26  ;;  %199 = vrcp.f32 %v133_v28 }
  0x67   :  { %201 = vrcp.f32 %v134_v29 }
  0x6f   :  { %v200_v30 = vpop.eup %199 }
  0x70   :  { %v136_v31 = vmul.f32 %v200_v30, %v131_v25 }
  0x71   :  { %v202_v32 = vpop.eup %201 }
  0x72   :  { %v138_v33 = vmul.f32 %v202_v32, %v132_v26  ;;  %203 = vlog2.f32 %v136_v31 }
  0x74   :  { %205 = vlog2.f32 %v138_v33 }
  0x7c   :  { %v204_v37 = vpop.eup %203 }
  0x7d   :  { %v140_v38 = vmul.f32 0.6931472, %v204_v37 }
  0x7e   :  { %v206_v39 = vpop.eup %205 }
  0x7f   :  { %v142_v40 = vmul.f32 0.6931472, %v206_v39 }
  0x81   :  { %v145_v42 = vcombine.low %v140_v38, %v142_v40 }
  0x83   :  { %v152_v43 = vrot.slane %v145_v42, %v151_v41 }
  0x85   :  { %v159_v44 = vrot.slane %v152_v43, %v151_v41 }
  0x87   :  { %165 = vst.msk [vmem:[#allocation5] sm:$0x3] %vm163_vm2, %v159_v44 }
  0x88   :  { %240 = shalt.err (!%p237_p12)
}
  0x89   :  { %s241_s28 = scalar_lea.hbm %s317_s2, 32 }
  0x8a   :  { %p242_p13 = scmp.ne.s32.totalorder %s317_s2, %s241_s28  ;;  %p245_p0 = scmp.lt.u32.totalorder %s241_s28, %s317_s2 }
  0x8c   :  { %p247_p1 = pnand %p245_p0, %p242_p13 }
  0x8e   :  { %250 = shalt.err (!%p247_p1)
}
  0x8f   :  { %175 = dma.vmem_to_hbm [thread:$0]  %s173_s24, 32, %s317_s2, [#allocation4]  }
  0x90   :  { %253 = dma.done.wait [#allocation4], 32  }
  0x91   :  { %254 = vsyncadd [#allocation4], 4294967264 }
  0x92   :  { %179 = vsyncpa [#allocation3], 1 }
  0x93   :  { %180 = vsyncpa [#allocation4], 1 }

</bundles_post_ra>
